<compile_context>
chip_gen: v6e
topology: v6e:2x2x1
jax: 0.10.0
libtpu: 0.0.40
codegen_flags: <defaults>
</compile_context>

<pallas_src>
import jax
import jax.numpy as jnp
import numpy as np
from jax.experimental import pallas as pl
from jax.experimental.pallas import tpu as pltpu


# -----------------------------------------------------------------------------
# Kernel 1: hyper-networks + mixing.  All FLOPs of the module, tiny outputs.
# -----------------------------------------------------------------------------
def make_hypermix_kernel(n_agents, action_dim):
    N, A = n_agents, action_dim
    NA = N * A

    def kernel(actions_ref, states_ref, w_fused_ref, b_fused_ref,
               expand_ref, seg_ref, mixed_ref, b_ref):
        states = states_ref[...]                                    # (B, S)

        # One fused MXU pass for both hyper-nets: (B,S)@(S,NA+A) + (1,NA+A)
        h = jnp.dot(states, w_fused_ref[...],
                    preferred_element_type=jnp.float32) + b_fused_ref[...]
        w = jnp.abs(h[:, :NA])                                      # (B, NA)
        b = h[:, NA:NA + A]                                         # (B, A)

        # Expand raw (B, N) actions to the (B, N*A) lane layout of w with an
        # MXU dot against a constant 0/1 matrix (expand[n, n*A+a] = 1).
        a_exp = jnp.dot(actions_ref[...], expand_ref[...],
                        preferred_element_type=jnp.float32)         # (B, NA)

        # mixed[j, a] = sum_n actions[j, n] * w[j, n*A+a]
        # Segment-sum over the N lane groups as a single MXU dot
        # (seg[n*A+a, a] = 1) instead of unrolled lane slices.
        mixed = jnp.dot(a_exp * w, seg_ref[...],
                        preferred_element_type=jnp.float32)         # (B, A)

        mixed_ref[...] = mixed
        b_ref[...] = b

    return kernel


# -----------------------------------------------------------------------------
# Kernel 2: the O(B^2*A) broadcast, gridded over lane-dense output tiles.
#   out_flat[i, j*A + a] = mixed[j, a] + b[i, a]
# -----------------------------------------------------------------------------
def broadcast_kernel(mixed_flat_ref, b_ref, sel_ref, out_ref):
    # Lane-replicate b across the tile with an MXU dot (sel[a, c] = 1 iff flat
    # column c corresponds to action-dim a), then broadcast-add the already
    # lane-flat mixed row.  One dot + one full-width add + one unmasked store.
    b_rep = jnp.dot(b_ref[...], sel_ref[...],
                    preferred_element_type=jnp.float32)             # (TI, TW)
    out_ref[...] = mixed_flat_ref[...] + b_rep                      # (TI, TW)


def _pick_tiles(batch, action_dim, lane=128, max_rows=256, max_lane_width=2048):
    """Output tile plan: TI rows x (TJ*A + pad) lanes, lane-dense when possible."""
    B, A = batch, action_dim

    ti = B
    c = max_rows
    while c >= 8:
        if c <= B and B % c == 0:
            ti = c
            break
        c //= 2

    tj = B
    d = max(1, max_lane_width // A)
    while d >= 1:
        if d <= B and B % d == 0 and (d * A) % lane == 0:
            tj = d
            break
        d -= 1

    pad = 0
    if (tj * A) % lane != 0:
        # Single-tile fallback (e.g. the toy B*A=32 demo): pad the flat lane
        # dim to a 128 multiple so the store is unmasked; wrapper slices it off.
        pad = (-(B * A)) % lane
    return ti, tj, pad


def qmix_forward(actions, states, ww, bw, wb, bb):
    """actions (B,N); states (B,S); hyper_w: ww (S,N*A), bw (1,N*A);
    hyper_b: wb (S,A), bb (1,A).  Returns (B, B, A), matching PyTorch."""
    f32 = jnp.float32
    actions = jnp.asarray(actions, f32)
    states = jnp.asarray(states, f32)
    B, N = actions.shape
    NA = ww.shape[1]
    A = wb.shape[1]
    assert NA == N * A

    # Wrapper-side layout plumbing (tiny constants, fused by XLA):
    # TODO(synk): at very large B, cast states/w_fused to bf16 here (keep the
    # f32 accumulation in-kernel) to halve hyper-net HBM traffic.
    w_fused = jnp.concatenate([ww, wb], axis=1).astype(f32)        # (S, NA+A)
    b_fused = jnp.concatenate([bw, bb], axis=1).astype(f32)        # (1, NA+A)
    eye_a = jnp.eye(A, dtype=f32)
    expand_mat = jnp.repeat(jnp.eye(N, dtype=f32), A, axis=1)      # (N, NA)
    seg_mat = jnp.tile(eye_a, (N, 1))                              # (NA, A)

    # --- kernel 1: hyper-nets + mixing (all FLOPs, tiny outputs) ------------
    mixed, b = pl.pallas_call(
        make_hypermix_kernel(N, A),
        out_shape=(jax.ShapeDtypeStruct((B, A), f32),
                   jax.ShapeDtypeStruct((B, A), f32)),
        in_specs=[pl.BlockSpec(memory_space=pltpu.MemorySpace.VMEM)] * 6,
        out_specs=(pl.BlockSpec(memory_space=pltpu.MemorySpace.VMEM),
                   pl.BlockSpec(memory_space=pltpu.MemorySpace.VMEM)),
    )(actions, states, w_fused, b_fused, expand_mat, seg_mat)

    # --- kernel 2: gridded lane-dense broadcast into (B, B*A) ---------------
    ti, tj, pad = _pick_tiles(B, A)
    TW = tj * A + pad                    # lane width of one output tile
    W = B * A + pad                      # flat output width
    GI, GJ = B // ti, W // TW

    mixed_flat = mixed.reshape(1, B * A)                           # tiny
    sel = jnp.tile(eye_a, (1, tj))                                 # (A, tj*A)
    if pad:
        mixed_flat = jnp.pad(mixed_flat, ((0, 0), (0, pad)))
        sel = jnp.pad(sel, ((0, 0), (0, pad)))                     # (A, TW)

    out_flat = pl.pallas_call(
        broadcast_kernel,
        out_shape=jax.ShapeDtypeStruct((B, W), f32),
        grid=(GI, GJ),
        in_specs=[
            pl.BlockSpec((1, TW), lambda i, j: (0, j)),            # mixed_flat
            pl.BlockSpec((ti, A), lambda i, j: (i, 0)),            # b
            pl.BlockSpec((A, TW), lambda i, j: (0, 0)),            # sel (const)
        ],
        out_specs=pl.BlockSpec((ti, TW), lambda i, j: (i, j)),
        compiler_params=pltpu.CompilerParams(
            dimension_semantics=("parallel", "parallel")),
    )(mixed_flat, b, sel)

    # Slice off lane padding (no-op when pad == 0) and reshape to (B, B, A).
    return out_flat[:, :B * A].reshape(B, B, A)


def qmix_reference(actions, states, ww, bw, wb, bb, n_agents, action_dim):
    B = actions.shape[0]
    w = jnp.abs(states @ ww + bw).reshape(B, n_agents, action_dim)
    b = (states @ wb + bb).reshape(B, 1, action_dim)
    mixed = jnp.einsum('bn,bna->ba', actions.reshape(B, -1), w)    # (B, A)
    return mixed[None, :, :] + b                                   # (B, B, A)


if __name__ == "__main__":
    # Small shapes consistent with the module.
    batch_size = 4
    state_dim = 32
    n_agents = 4
    action_dim = 8

    key = jax.random.PRNGKey(0)
    k_act, k_st, k_ww, k_bw, k_wb, k_bb = jax.random.split(key, 6)

    actions = jax.random.normal(k_act, (batch_size, n_agents), dtype=jnp.float32)
    states = jax.random.normal(k_st, (batch_size, state_dim), dtype=jnp.float32)

    # Deterministic Linear params (stored transposed: (in, out)).
    bound_w = 1.0 / np.sqrt(state_dim)
    ww = jax.random.uniform(k_ww, (state_dim, n_agents * action_dim),
                            minval=-bound_w, maxval=bound_w, dtype=jnp.float32)
    bw = jax.random.uniform(k_bw, (1, n_agents * action_dim),
                            minval=-bound_w, maxval=bound_w, dtype=jnp.float32)
    wb = jax.random.uniform(k_wb, (state_dim, action_dim),
                            minval=-bound_w, maxval=bound_w, dtype=jnp.float32)
    bb = jax.random.uniform(k_bb, (1, action_dim),
                            minval=-bound_w, maxval=bound_w, dtype=jnp.float32)

    out = qmix_forward(actions, states, ww, bw, wb, bb)
    out = jax.block_until_ready(out)

    ref = qmix_reference(actions, states, ww, bw, wb, bb, n_agents, action_dim)
    assert out.shape == (batch_size, batch_size, action_dim)
    np.testing.assert_allclose(np.asarray(out), np.asarray(ref), rtol=1e-5, atol=1e-5)

    print("KERNEL_OK")
</pallas_src>

<mosaic_0001>
module attributes {stable_mosaic.version = 11 : i64} {
  func.func @kernel(%arg0: memref<4x4xf32, #tpu.memory_space<vmem>>, %arg1: memref<4x32xf32, #tpu.memory_space<vmem>>, %arg2: memref<32x40xf32, #tpu.memory_space<vmem>>, %arg3: memref<1x40xf32, #tpu.memory_space<vmem>>, %arg4: memref<4x32xf32, #tpu.memory_space<vmem>>, %arg5: memref<32x8xf32, #tpu.memory_space<vmem>>, %arg6: memref<4x8xf32, #tpu.memory_space<vmem>>, %arg7: memref<4x8xf32, #tpu.memory_space<vmem>>) attributes {dimension_semantics = [], scalar_prefetch = 0 : i64, scratch_operands = 0 : i64, tpu.core_type = #tpu.core_type<tc>} {
    %c0 = arith.constant 0 : index
    %c0_0 = arith.constant 0 : index
    %0 = vector.load %arg1[%c0, %c0_0] : memref<4x32xf32, #tpu.memory_space<vmem>>, vector<4x32xf32>
    %c0_1 = arith.constant 0 : index
    %c0_2 = arith.constant 0 : index
    %1 = vector.load %arg2[%c0_1, %c0_2] : memref<32x40xf32, #tpu.memory_space<vmem>>, vector<32x40xf32>
    %cst = arith.constant dense<0.000000e+00> : vector<4x40xf32>
    %2 = tpu.matmul %0, %1, %cst {dimension_numbers = #tpu.dot_dimension_numbers<[1], [0], [0], [1], [0, 0, 1, 1], [], []>} : vector<4x32xf32>, vector<32x40xf32>, vector<4x40xf32> -> vector<4x40xf32>
    %c0_3 = arith.constant 0 : index
    %c0_4 = arith.constant 0 : index
    %3 = vector.load %arg3[%c0_3, %c0_4] : memref<1x40xf32, #tpu.memory_space<vmem>>, vector<1x40xf32>
    %4 = vector.broadcast %3 : vector<1x40xf32> to vector<4x40xf32>
    %5 = arith.addf %2, %4 : vector<4x40xf32>
    %6 = vector.extract_strided_slice %5 {offsets = [0, 0], sizes = [4, 32], strides = [1, 1]} : vector<4x40xf32> to vector<4x32xf32>
    %7 = math.absf %6 : vector<4x32xf32>
    %8 = vector.extract_strided_slice %5 {offsets = [0, 32], sizes = [4, 8], strides = [1, 1]} : vector<4x40xf32> to vector<4x8xf32>
    %c0_5 = arith.constant 0 : index
    %c0_6 = arith.constant 0 : index
    %9 = vector.load %arg0[%c0_5, %c0_6] : memref<4x4xf32, #tpu.memory_space<vmem>>, vector<4x4xf32>
    %c0_7 = arith.constant 0 : index
    %c0_8 = arith.constant 0 : index
    %10 = vector.load %arg4[%c0_7, %c0_8] : memref<4x32xf32, #tpu.memory_space<vmem>>, vector<4x32xf32>
    %cst_9 = arith.constant dense<0.000000e+00> : vector<4x32xf32>
    %11 = tpu.matmul %9, %10, %cst_9 {dimension_numbers = #tpu.dot_dimension_numbers<[1], [0], [0], [1], [0, 0, 1, 1], [], []>} : vector<4x4xf32>, vector<4x32xf32>, vector<4x32xf32> -> vector<4x32xf32>
    %12 = arith.mulf %11, %7 : vector<4x32xf32>
    %c0_10 = arith.constant 0 : index
    %c0_11 = arith.constant 0 : index
    %13 = vector.load %arg5[%c0_10, %c0_11] : memref<32x8xf32, #tpu.memory_space<vmem>>, vector<32x8xf32>
    %cst_12 = arith.constant dense<0.000000e+00> : vector<4x8xf32>
    %14 = tpu.matmul %12, %13, %cst_12 {dimension_numbers = #tpu.dot_dimension_numbers<[1], [0], [0], [1], [0, 0, 1, 1], [], []>} : vector<4x32xf32>, vector<32x8xf32>, vector<4x8xf32> -> vector<4x8xf32>
    %c0_13 = arith.constant 0 : index
    %c0_14 = arith.constant 0 : index
    %15 = vector.load %arg6[%c0_13, %c0_14] : memref<4x8xf32, #tpu.memory_space<vmem>>, vector<4x8xf32>
    tpu.vector_store %arg6[%c0_13, %c0_14], %14 {strides = array<i32>} : memref<4x8xf32, #tpu.memory_space<vmem>>, vector<4x8xf32>,
    %c0_15 = arith.constant 0 : index
    %c0_16 = arith.constant 0 : index
    %16 = vector.load %arg7[%c0_15, %c0_16] : memref<4x8xf32, #tpu.memory_space<vmem>>, vector<4x8xf32>
    tpu.vector_store %arg7[%c0_15, %c0_16], %8 {strides = array<i32>} : memref<4x8xf32, #tpu.memory_space<vmem>>, vector<4x8xf32>,
    return
  }
}

</mosaic_0001>

<bundles_post_ra>
// kernel: tpu_custom_call.1
= control target key start
LH: loop header
LB: loop body
LE: loop exit
PB: predicated region body
PF: predicated region fallthrough
CT: control target
= control target key end

     0   :  { %13 = vsyncpa [#allocation3], 0  ;;  %s531_s0 = inlined_call_operand.vmem [shape: f32[4,4], index: 0, kind: input, shape index: {}]   ;;  %s532_s1 = inlined_call_operand.vmem [shape: f32[4,32], index: 1, kind: input, shape index: {}]   ;;  %s533_s2 = inlined_call_operand.vmem [shape: f32[32,40], index: 2, kind: input, shape index: {}]   ;;  %s534_s3 = inlined_call_operand.vmem [shape: f32[1,40], index: 3, kind: input, shape index: {}]   ;;  %s535_s4 = inlined_call_operand.hbm [shape: f32[4,32], index: 4, kind: input, shape index: {}]   ;;  %s536_s5 = inlined_call_operand.vmem [shape: f32[32,8], index: 5, kind: input, shape index: {}]   ;;  %s537_s6 = inlined_call_operand.hbm [shape: f32[4,8], index: 6, kind: output, shape index: {0}]   ;;  %s538_s7 = inlined_call_operand.hbm [shape: f32[4,8], index: 7, kind: output, shape index: {1}]  }
   0x1   :  { %14 = vsyncpa [#allocation4], 0 }
   0x2   :  { %15 = vsyncpa [#allocation7], 0  ;;  %s436_s24 = smov [#allocation2]  }
   0x3   :  { %s30_s25 = sshll.u32 %s436_s24, 4  ;;  %s31_s25 = int_to_ptr.vmem [resolvable:$true] %s30_s25 }
   0x4   :  { %s378_s26 = scalar_lea.vmem %s31_s25, 64  ;;  %p383_p1 = scmp.lt.s32.totalorder %s31_s25, %s31_s25 }
   0x5   :  { %p379_p0 = scmp.ne.s32.totalorder %s31_s25, %s378_s26  ;;  %p384_p2 = scmp.lt.s32.totalorder %s378_s26, %s378_s26 }
   0x7   :  { %p385_p3 = por %p384_p2, %p383_p1 }
   0x9   :  { %p386_p4 = pnand %p385_p3, %p379_p0 }
   0xb   :  { %389 = shalt.err (!%p386_p4)
}
   0xc   :  { %33 = dma.hbm_to_vmem [thread:$0]  %s535_s4, 64, %s31_s25, [#allocation3]  }
   0xd   :  { %430 = dma.done.wait [#allocation3], 64  }
   0xe   :  { %431 = vsyncadd [#allocation3], 4294967232  ;;  %v437_v0 = vmov 0.0   ;;  %vm438_vm0 = vmmov 0   ;;  %vm132_vm1 = vcmask 1043456   ;;  %v43_v1 = vld [vmem:[%s533_s2 + $0x18] sm:$0xff] }
   0xf   :  { %337 = vmatprep.subr.mxu0 %v437_v0  ;;  %345 = vmatprep.mubr.msk.f32.mxu0 %vm438_vm0, %v437_v0  ;;  %v42_v2 = vld [vmem:[%s533_s2 + $0x10] sm:$0xff]  ;;  %vm128_vm2 = vcmask 31744   ;;  %v127_v3 = vld [vmem:[#allocation2] sm:$0xf]  ;;  %v41_v4 = vld [vmem:[%s533_s2 + $0x8] sm:$0xff]  ;;  %vm51_vm3 = vcmask 261120  }
  0x10   :  { %348 = vmatprep.subr.mxu1 %v437_v0  ;;  %350 = vmatprep.mubr.msk.f32.mxu1 %vm438_vm0, %v437_v0  ;;  %v126_v5 = vld [vmem:[%s531_s0] sm:$0xf]  ;;  %v210_v8 = vld [vmem:[%s536_s5 + $0x18] sm:$0xff]  ;;  %v209_v9 = vld [vmem:[%s536_s5 + $0x10] sm:$0xff]  ;;  %s439_s24 = smov 96   ;;  %s440_s25 = smov [#allocation6]  }
  0x11   :  { %338 = vmatpush3.msra.mxu0 %v43_v1  ;;  %349 = vmatpush3.msk.msra.mxu1 %vm132_vm1, %v127_v3  ;;  %v40_v6 = vld [vmem:[%s533_s2] sm:$0xff]  ;;  %v208_v10 = vld [vmem:[%s536_s5 + $0x8] sm:$0xff]  ;;  %s307_s26 = sshll.u32 %s440_s25, 4  ;;  %vm284_vm4 = vcmask 60416   ;;  %s308_s26 = int_to_ptr.vmem [resolvable:$true] %s307_s26 }
  0x12   :  { %339 = vmatprep.subr.mxu0 %v437_v0  ;;  %351 = vmatmul.mubr.msk.f32.vlgmr.msra.gmra.mxu1 %vm128_vm2, %v126_v5  ;;  %v39_v7 = vld [vmem:[%s532_s1] sm:$0xf]  ;;  %p395_p6 = scmp.lt.s32.totalorder %s308_s26, %s308_s26 }
  0x13   :  { %340 = vmatpush3.msra.mxu0 %v42_v2  ;;  %353 = vmatprep.subr.mxu1 %v437_v0  ;;  %v207_v11 = vld [vmem:[%s536_s5] sm:$0xff]  ;;  %s390_s5 = scalar_lea.vmem %s308_s26, 64 }
  0x14   :  { %341 = vmatprep.subr.mxu0 %v437_v0  ;;  %361 = vmatprep.mubr.msk.f32.mxu1 %vm438_vm0, %v437_v0  ;;  %v320_v14 = vld [vmem:[%s534_s3] ss:$0 sm:$0xff]  ;;  %p391_p5 = scmp.ne.s32.totalorder %s308_s26, %s390_s5  ;;  %p396_p7 = scmp.lt.s32.totalorder %s390_s5, %s390_s5 }
  0x15   :  { %342 = vmatpush3.msra.mxu0 %v41_v4  ;;  %354 = vmatpush3.msra.mxu1 %v210_v8 }
  0x16   :  { %343 = vmatprep.subr.mxu0 %v437_v0  ;;  %355 = vmatprep.subr.mxu1 %v437_v0  ;;  %p397_p8 = por %p396_p7, %p395_p6 }
  0x17   :  { %344 = vmatpush3.msra.mxu0 %v40_v6  ;;  %356 = vmatpush3.msra.mxu1 %v209_v9 }
  0x18   :  { %346 = vmatmul.mubr.msk.f32.vlgmr.msra.gmra.mxu0 %vm51_vm3, %v39_v7  ;;  %357 = vmatprep.subr.mxu1 %v437_v0  ;;  %p398_p9 = pnand %p397_p8, %p391_p5 }
  0x19   :  { %358 = vmatpush3.msra.mxu1 %v208_v10 }
  0x1a   :  { %359 = vmatprep.subr.mxu1 %v437_v0 }
  0x1b   :  { %360 = vmatpush3.msra.mxu1 %v207_v11 }
  0xd2   :  { %v202_v12 = vpop.f32.mrf.mxu1 }
  0xd4   :  { %v352_v13 = vpop.f32.mrf.mxu1 }
  0xd8   :  { %v121_v15 = vpop.f32.mrf.mxu0 }
  0xd9   :  { %v122_v16 = vadd.f32 %v320_v14, %v121_v15 }
  0xda   :  { %v347_v17 = vpop.f32.mrf.mxu0 }
  0xdb   :  { %v125_v18 = vand.u32 2147483647, %v122_v16  ;;  %287 = vrot.lane.b32.xlu0 %v122_v16, %s439_s24 }
  0xdd   :  { %v206_v19 = vmul.f32 %v202_v12, %v125_v18 }
  0xdf   :  { %362 = vmatmul.mubr.msk.f32.vlgmr.msra.gmra.mxu1 %vm51_vm3, %v206_v19 }
 0x14d   :  { %v288_v20 = vpop.permute.xlu0 %287 }
 0x14e   :  { %290 = vst.msk [vmem:[#allocation6] sm:$0xf] %vm284_vm4, %v288_v20 }
 0x14f   :  { %401 = shalt.err (!%p398_p9)
}
 0x150   :  { %310 = dma.vmem_to_hbm [thread:$0]  %s308_s26, 64, %s538_s7, [#allocation7]  }
 0x151   :  { %s441_s28 = smov [#allocation5]  }
 0x152   :  { %s297_s29 = sshll.u32 %s441_s28, 4  ;;  %s298_s29 = int_to_ptr.vmem [resolvable:$true] %s297_s29 }
 0x153   :  { %s410_s30 = scalar_lea.vmem %s298_s29, 64  ;;  %p415_p11 = scmp.lt.s32.totalorder %s298_s29, %s298_s29 }
 0x154   :  { %p411_p10 = scmp.ne.s32.totalorder %s298_s29, %s410_s30  ;;  %p416_p12 = scmp.lt.s32.totalorder %s410_s30, %s410_s30 }
 0x156   :  { %p417_p13 = por %p416_p12, %p415_p11 }
 0x158   :  { %p418_p0 = pnand %p417_p13, %p411_p10 }
 0x19f   :  { %v280_v21 = vpop.f32.mrf.mxu1 }
 0x1a0   :  { %285 = vst.msk [vmem:[#allocation5] sm:$0xf] %vm284_vm4, %v280_v21 }
 0x1a1   :  { %v363_v22 = vpop.f32.mrf.mxu1 }
 0x1a2   :  { %421 = shalt.err (!%p418_p0)
}
 0x1a3   :  { %300 = dma.vmem_to_hbm [thread:$0]  %s298_s29, 64, %s537_s6, [#allocation4]  }
 0x1a4   :  { %432 = dma.done.wait [#allocation4], 64  }
 0x1a5   :  { %433 = vsyncadd [#allocation4], 4294967232 }
 0x1a6   :  { %434 = dma.done.wait [#allocation7], 64  }
 0x1a7   :  { %435 = vsyncadd [#allocation7], 4294967232 }
 0x1a8   :  { %317 = vsyncpa [#allocation3], 1 }
 0x1a9   :  { %318 = vsyncpa [#allocation4], 1 }
 0x1aa   :  { %319 = vsyncpa [#allocation7], 1 }

</bundles_post_ra>
